<compile_context>
chip_gen: v7x
topology: tpu7x:2x2x1
jax: 0.10.0
libtpu: 0.0.40
codegen_flags: <defaults>
</compile_context>

<pallas_src>
import functools

import jax
import jax.numpy as jnp
from jax.experimental import pallas as pl
from jax.experimental.pallas import tpu as pltpu


_LANE = 128
_PAD_N = 256          # node-count padding multiple (rows/cols of adj and output)


def _round_up(x, m):
    return ((x + m - 1) // m) * m


def _pick_tile(dim, target, multiple):
    """Largest tile <= target that is a multiple of `multiple` and divides `dim`.
    Falls back to the full dim (always a legal block shape)."""
    if dim <= target:
        return dim
    t = (target // multiple) * multiple
    while t >= multiple:
        if dim % t == 0:
            return t
        t -= multiple
    return dim


def _pad2(a, rows, cols):
    return jnp.pad(a, ((0, rows - a.shape[0]), (0, cols - a.shape[1])))


# ---------------------------------------------------------------------------
# Kernel 1: tiled matmul  C = A @ B  (optional fused ReLU), f32 accumulation
# ---------------------------------------------------------------------------
def _matmul_kernel(a_ref, b_ref, o_ref, acc_ref, *, apply_relu):
    @pl.when(pl.program_id(2) == 0)
    def _():
        acc_ref[...] = jnp.zeros_like(acc_ref)

    acc_ref[...] += jnp.dot(a_ref[...], b_ref[...],
                            preferred_element_type=jnp.float32)

    @pl.when(pl.program_id(2) == pl.num_programs(2) - 1)
    def _():
        out = acc_ref[...]
        if apply_relu:
            out = jnp.maximum(out, 0.0)
        o_ref[...] = out.astype(o_ref.dtype)


def matmul(a, b, *, apply_relu=False, tm=256, tn=512, tk=512):
    m, k = a.shape
    k2, n = b.shape
    assert k == k2
    tm = _pick_tile(m, tm, 8)
    tn = _pick_tile(n, tn, _LANE)
    tk = _pick_tile(k, tk, _LANE)
    grid = (m // tm, n // tn, k // tk)
    return pl.pallas_call(
        functools.partial(_matmul_kernel, apply_relu=apply_relu),
        out_shape=jax.ShapeDtypeStruct((m, n), jnp.float32),
        grid_spec=pltpu.PrefetchScalarGridSpec(
            num_scalar_prefetch=0,
            grid=grid,
            in_specs=[
                pl.BlockSpec((tm, tk), lambda i, j, kk: (i, kk)),
                pl.BlockSpec((tk, tn), lambda i, j, kk: (kk, j)),
            ],
            out_specs=pl.BlockSpec((tm, tn), lambda i, j, kk: (i, j)),
            scratch_shapes=[pltpu.VMEM((tm, tn), jnp.float32)],
        ),
        compiler_params=pltpu.CompilerParams(
            dimension_semantics=("parallel", "parallel", "arbitrary")),
    )(a, b)


# ---------------------------------------------------------------------------
# Kernel 2: gravity decoder tile
#   out[i, j] = mass[j] - log(sq[i] + sq[j] - 2 * <z_i, z_j> + eps)
# ---------------------------------------------------------------------------
def _gravity_decode_kernel(zr_ref, zc_ref, sqi_ref, sqj_ref, mass_ref, o_ref,
                           *, epsilon):
    # (tm, d) x (tn, d)^T on the MXU; contraction over the padded lane dim.
    x2 = jax.lax.dot_general(
        zr_ref[...], zc_ref[...],
        dimension_numbers=(((1,), (1,)), ((), ())),
        preferred_element_type=jnp.float32)
    dist = sqi_ref[...] + sqj_ref[...] - 2.0 * x2 + epsilon
    # NOTE: no clamp, matching torch; with tiny epsilon consider jnp.maximum(dist, eps).
    o_ref[...] = (mass_ref[...] - jnp.log(dist)).astype(o_ref.dtype)


def gravity_decode(zemb, sq_col, sq_row, mass_row, *, epsilon, tm=256, tn=512):
    n_pad, d_pad = zemb.shape
    tm = _pick_tile(n_pad, tm, 8)
    tn = _pick_tile(n_pad, tn, _LANE)
    grid = (n_pad // tm, n_pad // tn)
    return pl.pallas_call(
        functools.partial(_gravity_decode_kernel, epsilon=epsilon),
        out_shape=jax.ShapeDtypeStruct((n_pad, n_pad), jnp.float32),
        grid_spec=pltpu.PrefetchScalarGridSpec(
            num_scalar_prefetch=0,
            grid=grid,
            in_specs=[
                pl.BlockSpec((tm, d_pad), lambda i, j: (i, 0)),   # z rows   (i tile)
                pl.BlockSpec((tn, d_pad), lambda i, j: (j, 0)),   # z "cols" (j tile)
                pl.BlockSpec((tm, 1), lambda i, j: (i, 0)),       # ||z_i||^2
                pl.BlockSpec((1, tn), lambda i, j: (0, j)),       # ||z_j||^2 (lane row)
                pl.BlockSpec((1, tn), lambda i, j: (0, j)),       # mass_j    (lane row)
            ],
            out_specs=pl.BlockSpec((tm, tn), lambda i, j: (i, j)),
        ),
        compiler_params=pltpu.CompilerParams(
            dimension_semantics=("parallel", "parallel")),
    )(zemb, zemb, sq_col, sq_row, mass_row)


# ---------------------------------------------------------------------------
# Forward pass
# ---------------------------------------------------------------------------
def gravity_gae_forward(x, adj, w1, w2, *, epsilon=0.01, normalize=False):
    n, d_in = x.shape
    d_h = w1.shape[1]
    d_z = w2.shape[1]
    d_e = d_z - 1                       # embedding dims (last column of z is mass)

    n_pad = _round_up(max(n, _PAD_N), _PAD_N)
    d_h_pad = _round_up(d_h, _LANE)
    d_e_pad = _round_up(d_z, _LANE)     # room for embedding cols + one mass lane

    f32 = jnp.float32
    x_p = _pad2(x.astype(f32), n_pad, d_in)     # tiny d_in kept as a full-dim block
    adj_p = _pad2(adj.astype(f32), n_pad, n_pad)
    w1_p = _pad2(w1.astype(f32), d_in, d_h_pad)

    # W2 padded to a full lane block: embedding weights in lanes [0, d_e),
    # the mass column parked in padding lane d_e -> one adjacency pass yields both.
    w2_p = jnp.zeros((d_h_pad, d_e_pad), f32)
    w2_p = w2_p.at[:d_h, :d_e].set(w2[:, :d_e].astype(f32))
    w2_p = w2_p.at[:d_h, d_e].set(w2[:, d_e].astype(f32))

    # ---- encoder -----------------------------------------------------------
    # layer 1: (adj @ x) @ W1  (input_dim < hid_dim: contract the small dim last)
    t1 = matmul(adj_p, x_p)                        # (n_pad, d_in)
    h = matmul(t1, w1_p, apply_relu=True)          # (n_pad, d_h_pad), fused ReLU
    # layer 2: adj @ (h @ W2)  (z_dim < hid_dim: contract the small dim first)
    s2 = matmul(h, w2_p)                           # (n_pad, d_e_pad)
    z = matmul(adj_p, s2)                          # (n_pad, d_e_pad)

    # ---- decoder prep (O(N*d) layout plumbing in plain JAX) ----------------
    mass_row = z[:, d_e][None, :]                  # (1, n_pad), lane-oriented
    lane_mask = (jnp.arange(d_e_pad) < d_e).astype(f32)[None, :]
    zemb = z * lane_mask                           # zero the mass + padding lanes
    if normalize:                                  # torch F.normalize(p=2, dim=1)
        sumsq = jnp.sum(zemb * zemb, axis=1, keepdims=True)
        zemb = zemb * jax.lax.rsqrt(jnp.maximum(sumsq, 1e-24))
    sq = jnp.sum(zemb * zemb, axis=1)              # precompute ||z||^2 once
    sq_col = sq[:, None]                           # (n_pad, 1)
    sq_row = sq[None, :]                           # (1, n_pad)  -- "x1.T" as a lane row

    out_pad = gravity_decode(zemb, sq_col, sq_row, mass_row, epsilon=epsilon)
    return out_pad[:n, :n]


# ---------------------------------------------------------------------------
# Reference (pure JAX, mirrors the torch module) for sanity check
# ---------------------------------------------------------------------------
def _reference(x, adj, w1, w2, *, epsilon=0.01, normalize=False):
    h = jnp.maximum(adj @ (x @ w1), 0.0)
    z = adj @ (h @ w2)
    ze = z[:, :-1]
    if normalize:
        nrm = jnp.sqrt(jnp.sum(ze * ze, axis=1, keepdims=True))
        ze = ze / jnp.maximum(nrm, 1e-12)
    x1 = jnp.sum(ze ** 2, axis=1, keepdims=True)
    dist = x1 - 2.0 * (ze @ ze.T) + x1.T + epsilon
    mass = jnp.ones((z.shape[0], 1)) @ z[:, -1:].T
    return mass - jnp.log(dist)


# ---------------------------------------------------------------------------
if __name__ == "__main__":
    key = jax.random.PRNGKey(0)
    k_x, k_a, k_w1, k_w2 = jax.random.split(key, 4)

    N, INPUT_DIM, HID_DIM, Z_DIM = 16, 8, 32, 9  # z = 8-d embedding + 1 mass

    x = jax.random.normal(k_x, (N, INPUT_DIM), dtype=jnp.float32)

    # symmetric row-normalized adjacency with self-loops (typical GCN input)
    a = (jax.random.uniform(k_a, (N, N)) > 0.7).astype(jnp.float32)
    a = jnp.maximum(a, a.T) + jnp.eye(N, dtype=jnp.float32)
    deg = jnp.sum(a, axis=1, keepdims=True)
    adj = a / deg

    # deterministic glorot-style weight init (shapes from GraphConvolution)
    w1 = jax.random.normal(k_w1, (INPUT_DIM, HID_DIM), dtype=jnp.float32) * (
        1.0 / jnp.sqrt(INPUT_DIM))
    w2 = jax.random.normal(k_w2, (HID_DIM, Z_DIM), dtype=jnp.float32) * (
        1.0 / jnp.sqrt(HID_DIM))

    out = gravity_gae_forward(x, adj, w1, w2, epsilon=0.01, normalize=False)
    out = jax.block_until_ready(out)
    ref = _reference(x, adj, w1, w2, epsilon=0.01, normalize=False)
    assert out.shape == (N, N)
    assert jnp.allclose(out, ref, atol=2e-3, rtol=2e-3), \
        float(jnp.max(jnp.abs(out - ref)))

    out_n = gravity_gae_forward(x, adj, w1, w2, epsilon=0.01, normalize=True)
    out_n = jax.block_until_ready(out_n)
    ref_n = _reference(x, adj, w1, w2, epsilon=0.01, normalize=True)
    assert jnp.allclose(out_n, ref_n, atol=2e-3, rtol=2e-3), \
        float(jnp.max(jnp.abs(out_n - ref_n)))

    print("KERNEL_OK")
</pallas_src>

<mosaic_0001>
module attributes {stable_mosaic.version = 11 : i64} {
  func.func @_matmul_kernel(%arg0: i32, %arg1: i32, %arg2: i32, %arg3: memref<256x256xf32, #tpu.memory_space<vmem>>, %arg4: memref<256x8xf32, #tpu.memory_space<vmem>>, %arg5: memref<256x8xf32, #tpu.memory_space<vmem>>, %arg6: memref<256x8xf32, #tpu.memory_space<vmem>>) attributes {dimension_semantics = [#tpu.dimension_semantics<parallel>, #tpu.dimension_semantics<parallel>, #tpu.dimension_semantics<arbitrary>], iteration_bounds = array<i64: 1, 1, 1>, scalar_prefetch = 0 : i64, scratch_operands = 1 : i64, tpu.core_type = #tpu.core_type<tc>, window_params = [{transform_indices = @transform_0, window_bounds = array<i64: 256, 256>}, {transform_indices = @transform_1, window_bounds = array<i64: 256, 8>}, {transform_indices = @transform_2, window_bounds = array<i64: 256, 8>}]} {
    %c0_i32 = arith.constant 0 : i32
    %0 = arith.cmpi eq, %arg2, %c0_i32 : i32
    %1 = arith.extui %0 : i1 to i32
    %c0_i32_0 = arith.constant 0 : i32
    %2 = arith.cmpi ne, %1, %c0_i32_0 : i32
    scf.if %2 {
      %cst_10 = arith.constant 0.000000e+00 : f32
      %12 = vector.broadcast %cst_10 : f32 to vector<256x8xf32>
      %c0_11 = arith.constant 0 : index
      %c0_12 = arith.constant 0 : index
      %13 = vector.load %arg6[%c0_11, %c0_12] : memref<256x8xf32, #tpu.memory_space<vmem>>, vector<256x8xf32>
      tpu.vector_store %arg6[%c0_11, %c0_12], %12 {strides = array<i32>} : memref<256x8xf32, #tpu.memory_space<vmem>>, vector<256x8xf32>,
    } else {
    }
    %c0 = arith.constant 0 : index
    %c0_1 = arith.constant 0 : index
    %3 = vector.load %arg6[%c0, %c0_1] : memref<256x8xf32, #tpu.memory_space<vmem>>, vector<256x8xf32>
    %c0_2 = arith.constant 0 : index
    %c0_3 = arith.constant 0 : index
    %4 = vector.load %arg3[%c0_2, %c0_3] : memref<256x256xf32, #tpu.memory_space<vmem>>, vector<256x256xf32>
    %c0_4 = arith.constant 0 : index
    %c0_5 = arith.constant 0 : index
    %5 = vector.load %arg4[%c0_4, %c0_5] : memref<256x8xf32, #tpu.memory_space<vmem>>, vector<256x8xf32>
    %cst = arith.constant dense<0.000000e+00> : vector<256x8xf32>
    %6 = tpu.matmul %4, %5, %cst {dimension_numbers = #tpu.dot_dimension_numbers<[1], [0], [0], [1], [0, 0, 1, 1], [], []>} : vector<256x256xf32>, vector<256x8xf32>, vector<256x8xf32> -> vector<256x8xf32>
    %7 = arith.addf %3, %6 : vector<256x8xf32>
    %c0_6 = arith.constant 0 : index
    %c0_7 = arith.constant 0 : index
    %8 = vector.load %arg6[%c0_6, %c0_7] : memref<256x8xf32, #tpu.memory_space<vmem>>, vector<256x8xf32>
    tpu.vector_store %arg6[%c0_6, %c0_7], %7 {strides = array<i32>} : memref<256x8xf32, #tpu.memory_space<vmem>>, vector<256x8xf32>,
    %c0_i32_8 = arith.constant 0 : i32
    %9 = arith.cmpi eq, %arg2, %c0_i32_8 : i32
    %10 = arith.extui %9 : i1 to i32
    %c0_i32_9 = arith.constant 0 : i32
    %11 = arith.cmpi ne, %10, %c0_i32_9 : i32
    scf.if %11 {
      %c0_10 = arith.constant 0 : index
      %c0_11 = arith.constant 0 : index
      %12 = vector.load %arg6[%c0_10, %c0_11] : memref<256x8xf32, #tpu.memory_space<vmem>>, vector<256x8xf32>
      %c0_12 = arith.constant 0 : index
      %c0_13 = arith.constant 0 : index
      %13 = vector.load %arg5[%c0_12, %c0_13] : memref<256x8xf32, #tpu.memory_space<vmem>>, vector<256x8xf32>
      tpu.vector_store %arg5[%c0_12, %c0_13], %12 {strides = array<i32>} : memref<256x8xf32, #tpu.memory_space<vmem>>, vector<256x8xf32>,
    } else {
    }
    return
  }
  func.func @transform_0(%arg0: i32, %arg1: i32, %arg2: i32) -> (i32, i32) {
    %c0_i32 = arith.constant 0 : i32
    return %arg0, %arg2 : i32, i32
  }
  func.func @transform_1(%arg0: i32, %arg1: i32, %arg2: i32) -> (i32, i32) {
    %c0_i32 = arith.constant 0 : i32
    return %arg2, %arg1 : i32, i32
  }
  func.func @transform_2(%arg0: i32, %arg1: i32, %arg2: i32) -> (i32, i32) {
    %c0_i32 = arith.constant 0 : i32
    return %arg0, %arg1 : i32, i32
  }
}

</mosaic_0001>

<bundles_post_ra>
// kernel: tpu_custom_call.1
= control target key start
LH: loop header
LB: loop body
LE: loop exit
PB: predicated region body
PF: predicated region fallthrough
CT: control target
= control target key end

     0   :  { %7 = vsyncpa [#allocation4], 0  ;;  %s661_s9 = smov [#allocation3]   ;;  %s1013_s0 = inlined_call_operand.hbm [shape: f32[256,256], index: 0, kind: input, shape index: {}]   ;;  %s1014_s1 = inlined_call_operand.vmem [shape: f32[256,8], index: 1, kind: input, shape index: {}]   ;;  %s1015_s2 = inlined_call_operand.vmem [shape: f32[256,8], index: 2, kind: output, shape index: {}]  }
   0x1   :  { %s13_s10 = sshll.u32 %s661_s9, 4  ;;  %s637_s13 = scalar_lea.hbm %s1013_s0, 8192  ;;  %s14_s10 = int_to_ptr.vmem [resolvable:$true] %s13_s10 }
   0x2   :  { %p638_p0 = scmp.ne.s32.totalorder %s1013_s0, %s637_s13  ;;  %p641_p1 = scmp.lt.u32.totalorder %s637_s13, %s1013_s0 }
   0x4   :  { %p643_p2 = pnand %p641_p1, %p638_p0 }
   0x6   :  { %646 = shalt.err (!%p643_p2)
}
   0x7   :  { %s647_s18 = scalar_lea.vmem %s14_s10, 8192  ;;  %p652_p4 = scmp.lt.s32.totalorder %s14_s10, %s14_s10 }
   0x8   :  { %p648_p3 = scmp.ne.s32.totalorder %s14_s10, %s647_s18  ;;  %p653_p5 = scmp.lt.s32.totalorder %s647_s18, %s647_s18 }
   0xa   :  { %p654_p6 = por %p653_p5, %p652_p4 }
   0xc   :  { %p655_p7 = pnand %p654_p6, %p648_p3 }
   0xe   :  { %658 = shalt.err (!%p655_p7)
}
   0xf   :  { %s662_s19 = smov 256   ;;  %s663_s20 = smov 16  }
  0x10   :  { %19 = dma.hbm_to_vmem [thread:$0]  %s1013_s0, 8192, %s14_s10, [#allocation4], %s662_s19, %s662_s19, %s663_s20  }
  0x11   :  { %659 = dma.done.wait [#allocation4], 8192  }
  0x12   :  { %660 = vsyncadd [#allocation4], 4294959104  ;;  %v664_v0 = vmov 0.0|0.0   ;;  %vm29_vm0 = vcmask 64512   ;;  %v665_v1 = vmov 0.0   ;;  %v158_v2 = vld [vmem:[%s1014_s1] sm:$0xff] }
  0x13   :  { %552 = vmatprep.subr.bf16.mxu0 %v664_v0  ;;  %600 = vmatprep.subr.bf16.mxu1 %v664_v0  ;;  %30 = vst.msk [vmem:[#allocation2] sm:$0xff] %vm29_vm0, %v665_v1  ;;  %31 = vst.msk [vmem:[#allocation2 + $0x8] sm:$0xff] %vm29_vm0, %v665_v1  ;;  %v159_v3 = vld [vmem:[%s1014_s1 + $0x8] sm:$0xff]  ;;  %v160_v4 = vld [vmem:[%s1014_s1 + $0x10] sm:$0xff] }
  0x14   :  { %32 = vst.msk [vmem:[#allocation2 + $0x10] sm:$0xff] %vm29_vm0, %v665_v1  ;;  %33 = vst.msk [vmem:[#allocation2 + $0x18] sm:$0xff] %vm29_vm0, %v665_v1  ;;  %v553_v5 = vpack.c.bf16 %v159_v3, %v158_v2  ;;  %v161_v6 = vld [vmem:[%s1014_s1 + $0x18] sm:$0xff]  ;;  %v162_v8 = vld [vmem:[%s1014_s1 + $0x20] sm:$0xff] }
  0x15   :  { %34 = vst.msk [vmem:[#allocation2 + $0x20] sm:$0xff] %vm29_vm0, %v665_v1  ;;  %35 = vst.msk [vmem:[#allocation2 + $0x28] sm:$0xff] %vm29_vm0, %v665_v1  ;;  %v556_v7 = vpack.c.bf16 %v161_v6, %v160_v4  ;;  %v163_v9 = vld [vmem:[%s1014_s1 + $0x28] sm:$0xff]  ;;  %v164_v11 = vld [vmem:[%s1014_s1 + $0x30] sm:$0xff] }
  0x16   :  { %36 = vst.msk [vmem:[#allocation2 + $0x30] sm:$0xff] %vm29_vm0, %v665_v1  ;;  %37 = vst.msk [vmem:[#allocation2 + $0x38] sm:$0xff] %vm29_vm0, %v665_v1  ;;  %554 = vmatpush1.bf16.msra.mxu0 %v553_v5  ;;  %616 = vmatpush1.bf16.msra.mxu1 %v553_v5  ;;  %v559_v10 = vpack.c.bf16 %v163_v9, %v162_v8  ;;  %v165_v12 = vld [vmem:[%s1014_s1 + $0x38] sm:$0xff]  ;;  %v95_v13 = vld [vmem:[#allocation3 + $0x8] sm:$0xff] }
  0x17   :  { %38 = vst.msk [vmem:[#allocation2 + $0x40] sm:$0xff] %vm29_vm0, %v665_v1  ;;  %39 = vst.msk [vmem:[#allocation2 + $0x48] sm:$0xff] %vm29_vm0, %v665_v1  ;;  %555 = vmatprep.subr.bf16.mxu0 %v664_v0  ;;  %601 = vmatprep.subr.bf16.mxu1 %v664_v0  ;;  %v562_v14 = vpack.c.bf16 %v165_v12, %v164_v11  ;;  %v127_v15 = vld [vmem:[#allocation3 + $0x108] sm:$0xff]  ;;  %v166_v16 = vld [vmem:[%s1014_s1 + $0x40] sm:$0xff] }
  0x18   :  { %40 = vst.msk [vmem:[#allocation2 + $0x50] sm:$0xff] %vm29_vm0, %v665_v1  ;;  %41 = vst.msk [vmem:[#allocation2 + $0x58] sm:$0xff] %vm29_vm0, %v665_v1  ;;  %v167_v17 = vld [vmem:[%s1014_s1 + $0x48] sm:$0xff]  ;;  %254 = vmatprep.mubr.f32.mxu0 %v95_v13  ;;  %334 = vmatprep.mubr.f32.mxu1 %v127_v15  ;;  %v168_v19 = vld [vmem:[%s1014_s1 + $0x50] sm:$0xff] }
  0x19   :  { %42 = vst.msk [vmem:[#allocation2 + $0x60] sm:$0xff] %vm29_vm0, %v665_v1  ;;  %43 = vst.msk [vmem:[#allocation2 + $0x68] sm:$0xff] %vm29_vm0, %v665_v1  ;;  %v565_v18 = vpack.c.bf16 %v167_v17, %v166_v16  ;;  %v169_v20 = vld [vmem:[%s1014_s1 + $0x58] sm:$0xff]  ;;  %v170_v22 = vld [vmem:[%s1014_s1 + $0x60] sm:$0xff] }
  0x1a   :  { %44 = vst.msk [vmem:[#allocation2 + $0x70] sm:$0xff] %vm29_vm0, %v665_v1  ;;  %45 = vst.msk [vmem:[#allocation2 + $0x78] sm:$0xff] %vm29_vm0, %v665_v1  ;;  %557 = vmatpush1.bf16.msra.mxu0 %v556_v7  ;;  %617 = vmatpush1.bf16.msra.mxu1 %v556_v7  ;;  %v568_v21 = vpack.c.bf16 %v169_v20, %v168_v19  ;;  %v171_v23 = vld [vmem:[%s1014_s1 + $0x68] sm:$0xff]  ;;  %v172_v25 = vld [vmem:[%s1014_s1 + $0x70] sm:$0xff] }
  0x1b   :  { %46 = vst.msk [vmem:[#allocation2 + $0x80] sm:$0xff] %vm29_vm0, %v665_v1  ;;  %47 = vst.msk [vmem:[#allocation2 + $0x88] sm:$0xff] %vm29_vm0, %v665_v1  ;;  %558 = vmatprep.subr.bf16.mxu0 %v664_v0  ;;  %602 = vmatprep.subr.bf16.mxu1 %v664_v0  ;;  %v571_v24 = vpack.c.bf16 %v171_v23, %v170_v22  ;;  %v173_v26 = vld [vmem:[%s1014_s1 + $0x78] sm:$0xff]  ;;  %v174_v28 = vld [vmem:[%s1014_s1 + $0x80] sm:$0xff] }
  0x1c   :  { %48 = vst.msk [vmem:[#allocation2 + $0x90] sm:$0xff] %vm29_vm0, %v665_v1  ;;  %49 = vst.msk [vmem:[#allocation2 + $0x98] sm:$0xff] %vm29_vm0, %v665_v1  ;;  %v574_v27 = vpack.c.bf16 %v173_v26, %v172_v25  ;;  %v175_v29 = vld [vmem:[%s1014_s1 + $0x88] sm:$0xff]  ;;  %v176_v31 = vld [vmem:[%s1014_s1 + $0x90] sm:$0xff] }
  0x1d   :  { %50 = vst.msk [vmem:[#allocation2 + $0xa0] sm:$0xff] %vm29_vm0, %v665_v1  ;;  %51 = vst.msk [vmem:[#allocation2 + $0xa8] sm:$0xff] %vm29_vm0, %v665_v1  ;;  %v577_v30 = vpack.c.bf16 %v175_v29, %v174_v28  ;;  %v177_v32 = vld [vmem:[%s1014_s1 + $0x98] sm:$0xff]  ;;  %v178_v34 = vld [vmem:[%s1014_s1 + $0xa0] sm:$0xff] }
  0x1e   :  { %52 = vst.msk [vmem:[#allocation2 + $0xb0] sm:$0xff] %vm29_vm0, %v665_v1  ;;  %53 = vst.msk [vmem:[#allocation2 + $0xb8] sm:$0xff] %vm29_vm0, %v665_v1  ;;  %560 = vmatpush1.bf16.msra.mxu0 %v559_v10  ;;  %618 = vmatpush1.bf16.msra.mxu1 %v559_v10  ;;  %v580_v33 = vpack.c.bf16 %v177_v32, %v176_v31  ;;  %v179_v35 = vld [vmem:[%s1014_s1 + $0xa8] sm:$0xff]  ;;  %v180_v37 = vld [vmem:[%s1014_s1 + $0xb0] sm:$0xff] }
  0x1f   :  { %54 = vst.msk [vmem:[#allocation2 + $0xc0] sm:$0xff] %vm29_vm0, %v665_v1  ;;  %55 = vst.msk [vmem:[#allocation2 + $0xc8] sm:$0xff] %vm29_vm0, %v665_v1  ;;  %561 = vmatprep.subr.bf16.mxu0 %v664_v0  ;;  %603 = vmatprep.subr.bf16.mxu1 %v664_v0  ;;  %v583_v36 = vpack.c.bf16 %v179_v35, %v178_v34  ;;  %v181_v38 = vld [vmem:[%s1014_s1 + $0xb8] sm:$0xff]  ;;  %v182_v40 = vld [vmem:[%s1014_s1 + $0xc0] sm:$0xff] }
  0x20   :  { %56 = vst.msk [vmem:[#allocation2 + $0xd0] sm:$0xff] %vm29_vm0, %v665_v1  ;;  %57 = vst.msk [vmem:[#allocation2 + $0xd8] sm:$0xff] %vm29_vm0, %v665_v1  ;;  %v586_v39 = vpack.c.bf16 %v181_v38, %v180_v37  ;;  %v183_v41 = vld [vmem:[%s1014_s1 + $0xc8] sm:$0xff]  ;;  %v184_v43 = vld [vmem:[%s1014_s1 + $0xd0] sm:$0xff] }
  0x21   :  { %58 = vst.msk [vmem:[#allocation2 + $0xe0] sm:$0xff] %vm29_vm0, %v665_v1  ;;  %59 = vst.msk [vmem:[#allocation2 + $0xe8] sm:$0xff] %vm29_vm0, %v665_v1  ;;  %v589_v42 = vpack.c.bf16 %v183_v41, %v182_v40  ;;  %v185_v44 = vld [vmem:[%s1014_s1 + $0xd8] sm:$0xff]  ;;  %v186_v46 = vld [vmem:[%s1014_s1 + $0xe0] sm:$0xff] }
  0x22   :  { %60 = vst.msk [vmem:[#allocation2 + $0xf0] sm:$0xff] %vm29_vm0, %v665_v1  ;;  %61 = vst.msk [vmem:[#allocation2 + $0xf8] sm:$0xff] %vm29_vm0, %v665_v1  ;;  %563 = vmatpush1.bf16.msra.mxu0 %v562_v14  ;;  %619 = vmatpush1.bf16.msra.mxu1 %v562_v14  ;;  %v592_v45 = vpack.c.bf16 %v185_v44, %v184_v43  ;;  %v187_v47 = vld [vmem:[%s1014_s1 + $0xe8] sm:$0xff]  ;;  %v188_v49 = vld [vmem:[%s1014_s1 + $0xf0] sm:$0xff] }
  0x23   :  { %564 = vmatprep.subr.bf16.mxu0 %v664_v0  ;;  %604 = vmatprep.subr.bf16.mxu1 %v664_v0  ;;  %v595_v48 = vpack.c.bf16 %v187_v47, %v186_v46  ;;  %v189_v50 = vld [vmem:[%s1014_s1 + $0xf8] sm:$0xff]  ;;  %v94_v52 = vld [vmem:[#allocation3] sm:$0xff]  ;;  %v96_v56 = vld [vmem:[#allocation3 + $0x10] sm:$0xff] }
  0x24   :  { %v598_v51 = vpack.c.bf16 %v189_v50, %v188_v49  ;;  %v126_v53 = vld [vmem:[#allocation3 + $0x100] sm:$0xff]  ;;  %v97_v54 = vld [vmem:[#allocation3 + $0x18] sm:$0xff]  ;;  %v128_v57 = vld [vmem:[#allocation3 + $0x110] sm:$0xff] }
  0x25   :  { %v129_v55 = vld [vmem:[#allocation3 + $0x118] sm:$0xff]  ;;  %v99_v58 = vld [vmem:[#allocation3 + $0x28] sm:$0xff]  ;;  %v98_v60 = vld [vmem:[#allocation3 + $0x20] sm:$0xff] }
  0x26   :  { %566 = vmatpush1.bf16.msra.mxu0 %v565_v18  ;;  %620 = vmatpush1.bf16.msra.mxu1 %v565_v18  ;;  %v131_v59 = vld [vmem:[#allocation3 + $0x128] sm:$0xff]  ;;  %v130_v61 = vld [vmem:[#allocation3 + $0x120] sm:$0xff]  ;;  %v101_v62 = vld [vmem:[#allocation3 + $0x38] sm:$0xff] }
  0x27   :  { %567 = vmatprep.subr.bf16.mxu0 %v664_v0  ;;  %605 = vmatprep.subr.bf16.mxu1 %v664_v0  ;;  %v133_v63 = vld [vmem:[#allocation3 + $0x138] sm:$0xff]  ;;  %v132_v1 = vld [vmem:[#allocation3 + $0x130] sm:$0xff]  ;;  %v103_v2 = vld [vmem:[#allocation3 + $0x48] sm:$0xff] }
  0x28   :  { %v135_v3 = vld [vmem:[#allocation3 + $0x148] sm:$0xff]  ;;  %v102_v4 = vld [vmem:[#allocation3 + $0x40] sm:$0xff]  ;;  %v105_v6 = vld [vmem:[#allocation3 + $0x58] sm:$0xff] }
  0x29   :  { %v134_v5 = vld [vmem:[#allocation3 + $0x140] sm:$0xff]  ;;  %v137_v7 = vld [vmem:[#allocation3 + $0x158] sm:$0xff]  ;;  %v104_v8 = vld [vmem:[#allocation3 + $0x50] sm:$0xff] }
  0x2a   :  { %569 = vmatpush1.bf16.msra.mxu0 %v568_v21  ;;  %621 = vmatpush1.bf16.msra.mxu1 %v568_v21  ;;  %v136_v9 = vld [vmem:[#allocation3 + $0x150] sm:$0xff]  ;;  %v107_v10 = vld [vmem:[#allocation3 + $0x68] sm:$0xff]  ;;  %v106_v12 = vld [vmem:[#allocation3 + $0x60] sm:$0xff] }
  0x2b   :  { %570 = vmatprep.subr.bf16.mxu0 %v664_v0  ;;  %606 = vmatprep.subr.bf16.mxu1 %v664_v0  ;;  %v139_v11 = vld [vmem:[#allocation3 + $0x168] sm:$0xff]  ;;  %v138_v13 = vld [vmem:[#allocation3 + $0x160] sm:$0xff]  ;;  %v109_v14 = vld [vmem:[#allocation3 + $0x78] sm:$0xff] }
  0x2c   :  { %v141_v15 = vld [vmem:[#allocation3 + $0x178] sm:$0xff]  ;;  %v108_v16 = vld [vmem:[#allocation3 + $0x70] sm:$0xff]  ;;  %v111_v18 = vld [vmem:[#allocation3 + $0x88] sm:$0xff] }
  0x2d   :  { %v140_v17 = vld [vmem:[#allocation3 + $0x170] sm:$0xff]  ;;  %v143_v19 = vld [vmem:[#allocation3 + $0x188] sm:$0xff]  ;;  %v110_v20 = vld [vmem:[#allocation3 + $0x80] sm:$0xff] }
  0x2e   :  { %572 = vmatpush1.bf16.msra.mxu0 %v571_v24  ;;  %622 = vmatpush1.bf16.msra.mxu1 %v571_v24  ;;  %v142_v21 = vld [vmem:[#allocation3 + $0x180] sm:$0xff]  ;;  %v113_v22 = vld [vmem:[#allocation3 + $0x98] sm:$0xff]  ;;  %v112_v24 = vld [vmem:[#allocation3 + $0x90] sm:$0xff] }
  0x2f   :  { %573 = vmatprep.subr.bf16.mxu0 %v664_v0  ;;  %607 = vmatprep.subr.bf16.mxu1 %v664_v0  ;;  %v145_v23 = vld [vmem:[#allocation3 + $0x198] sm:$0xff]  ;;  %v144_v25 = vld [vmem:[#allocation3 + $0x190] sm:$0xff]  ;;  %v115_v26 = vld [vmem:[#allocation3 + $0xa8] sm:$0xff] }
  0x30   :  { %v114_v28 = vld [vmem:[#allocation3 + $0xa0] sm:$0xff]  ;;  %v149_v31 = vld [vmem:[#allocation3 + $0x1b8] sm:$0xff]  ;;  %v116_v32 = vld [vmem:[#allocation3 + $0xb0] sm:$0xff] }
  0x31   :  { %v146_v29 = vld [vmem:[#allocation3 + $0x1a0] sm:$0xff]  ;;  %v119_v34 = vld [vmem:[#allocation3 + $0xc8] sm:$0xff]  ;;  %v121_v38 = vld [vmem:[#allocation3 + $0xd8] sm:$0xff] }
  0x32   :  { %575 = vmatpush1.bf16.msra.mxu0 %v574_v27  ;;  %623 = vmatpush1.bf16.msra.mxu1 %v574_v27  ;;  %v147_v27 = vld [vmem:[#allocation3 + $0x1a8] sm:$0xff]  ;;  %v150_v37 = vld [vmem:[#allocation3 + $0x1c0] sm:$0xff]  ;;  %v120_v40 = vld [vmem:[#allocation3 + $0xd0] sm:$0xff] }
  0x33   :  { %576 = vmatprep.subr.bf16.mxu0 %v664_v0  ;;  %608 = vmatprep.subr.bf16.mxu1 %v664_v0  ;;  %v151_v35 = vld [vmem:[#allocation3 + $0x1c8] sm:$0xff]  ;;  %v152_v41 = vld [vmem:[#allocation3 + $0x1d0] sm:$0xff]  ;;  %v122_v44 = vld [vmem:[#allocation3 + $0xe0] sm:$0xff] }
  0x34   :  { %v155_v43 = vld [vmem:[#allocation3 + $0x1e8] sm:$0xff]  ;;  %v125_v46 = vld [vmem:[#allocation3 + $0xf8] sm:$0xff]  ;;  %v156_v49 = vld [vmem:[#allocation3 + $0x1f0] sm:$0xff] }
  0x35   :  { %v157_v47 = vld [vmem:[#allocation3 + $0x1f8] sm:$0xff]  ;;  %v62_v50 = vld [vmem:[#allocation2] sm:$0xff] }
  0x36   :  { %578 = vmatpush1.bf16.msra.mxu0 %v577_v30  ;;  %624 = vmatpush1.bf16.msra.mxu1 %v577_v30  ;;  %v117_v30 = vld [vmem:[#allocation3 + $0xb8] sm:$0xff] }
  0x37   :  { %579 = vmatprep.subr.bf16.mxu0 %v664_v0  ;;  %609 = vmatprep.subr.bf16.mxu1 %v664_v0 }
  0x3a   :  { %581 = vmatpush1.bf16.msra.mxu0 %v580_v33  ;;  %625 = vmatpush1.bf16.msra.mxu1 %v580_v33  ;;  %v148_v33 = vld [vmem:[#allocation3 + $0x1b0] sm:$0xff] }
  0x3b   :  { %582 = vmatprep.subr.bf16.mxu0 %v664_v0  ;;  %610 = vmatprep.subr.bf16.mxu1 %v664_v0 }
  0x3e   :  { %584 = vmatpush1.bf16.msra.mxu0 %v583_v36  ;;  %626 = vmatpush1.bf16.msra.mxu1 %v583_v36  ;;  %v118_v36 = vld [vmem:[#allocation3 + $0xc0] sm:$0xff] }
  0x3f   :  { %585 = vmatprep.subr.bf16.mxu0 %v664_v0  ;;  %611 = vmatprep.subr.bf16.mxu1 %v664_v0 }
  0x42   :  { %587 = vmatpush1.bf16.msra.mxu0 %v586_v39  ;;  %627 = vmatpush1.bf16.msra.mxu1 %v586_v39  ;;  %v153_v39 = vld [vmem:[#allocation3 + $0x1d8] sm:$0xff] }
  0x43   :  { %588 = vmatprep.subr.bf16.mxu0 %v664_v0  ;;  %612 = vmatprep.subr.bf16.mxu1 %v664_v0 }
  0x46   :  { %590 = vmatpush1.bf16.msra.mxu0 %v589_v42  ;;  %628 = vmatpush1.bf16.msra.mxu1 %v589_v42  ;;  %v123_v42 = vld [vmem:[#allocation3 + $0xe8] sm:$0xff] }
  0x47   :  { %591 = vmatprep.subr.bf16.mxu0 %v664_v0  ;;  %613 = vmatprep.subr.bf16.mxu1 %v664_v0 }
  0x4a   :  { %593 = vmatpush1.bf16.msra.mxu0 %v592_v45  ;;  %629 = vmatpush1.bf16.msra.mxu1 %v592_v45  ;;  %v154_v45 = vld [vmem:[#allocation3 + $0x1e0] sm:$0xff] }
  0x4b   :  { %594 = vmatprep.subr.bf16.mxu0 %v664_v0  ;;  %614 = vmatprep.subr.bf16.mxu1 %v664_v0 }
  0x4e   :  { %596 = vmatpush1.bf16.msra.mxu0 %v595_v48  ;;  %630 = vmatpush1.bf16.msra.mxu1 %v595_v48  ;;  %v124_v48 = vld [vmem:[#allocation3 + $0xf0] sm:$0xff] }
  0x4f   :  { %597 = vmatprep.subr.bf16.mxu0 %v664_v0  ;;  %615 = vmatprep.subr.bf16.mxu1 %v664_v0  ;;  %v100_v0 = vld [vmem:[#allocation3 + $0x30] sm:$0xff] }
  0x52   :  { %599 = vmatpush1.bf16.msra.mxu0 %v598_v51  ;;  %631 = vmatpush1.bf16.msra.mxu1 %v598_v51  ;;  %v78_v51 = vld [vmem:[#allocation2 + $0x80] sm:$0xff] }
  0x55   :  { %255 = vmatmul.mubr.f32.vlgmr.msra.gmra.mrb[0].mxu0 %v94_v52  ;;  %335 = vmatmul.mubr.f32.vlgmr.msra.gmra.mrb[0].mxu1 %v126_v53 }
  0x56   :  { %259 = vmatprep.mubr.f32.mxu0 %v97_v54  ;;  %339 = vmatprep.mubr.f32.mxu1 %v129_v55 }
  0x59   :  { %260 = vmatmul.mubr.f32.gmra.mrb[2].mxu0 %v96_v56  ;;  %340 = vmatmul.mubr.f32.gmra.mrb[2].mxu1 %v128_v57 }
  0x5a   :  { %264 = vmatprep.mubr.f32.mxu0 %v99_v58  ;;  %344 = vmatprep.mubr.f32.mxu1 %v131_v59  ;;  %v63_v58 = vld [vmem:[#allocation2 + $0x8] sm:$0xff] }
  0x5b   :  { %v79_v59 = vld [vmem:[#allocation2 + $0x88] sm:$0xff] }
  0x5d   :  { %265 = vmatmul.mubr.f32.gmra.mrb[4].mxu0 %v98_v60  ;;  %345 = vmatmul.mubr.f32.gmra.mrb[4].mxu1 %v130_v61 }
  0x5e   :  { %269 = vmatprep.mubr.f32.mxu0 %v101_v62  ;;  %349 = vmatprep.mubr.f32.mxu1 %v133_v63 }
  0x61   :  { %270 = vmatmul.mubr.f32.gmra.mrb[6].mxu0 %v100_v0  ;;  %350 = vmatmul.mubr.f32.gmra.mrb[6].mxu1 %v132_v1 }
  0x62   :  { %274 = vmatprep.mubr.f32.mxu0 %v103_v2  ;;  %354 = vmatprep.mubr.f32.mxu1 %v135_v3  ;;  %v64_v2 = vld [vmem:[#allocation2 + $0x10] sm:$0xff] }
  0x63   :  { %v80_v3 = vld [vmem:[#allocation2 + $0x90] sm:$0xff] }
  0x65   :  { %275 = vmatmul.mubr.f32.gmra.mrb[8].mxu0 %v102_v4  ;;  %355 = vmatmul.mubr.f32.gmra.mrb[8].mxu1 %v134_v5 }
  0x66   :  { %279 = vmatprep.mubr.f32.mxu0 %v105_v6  ;;  %359 = vmatprep.mubr.f32.mxu1 %v137_v7 }
  0x69   :  { %280 = vmatmul.mubr.f32.gmra.mrb[10].mxu0 %v104_v8  ;;  %360 = vmatmul.mubr.f32.gmra.mrb[10].mxu1 %v136_v9 }
  0x6a   :  { %284 = vmatprep.mubr.f32.mxu0 %v107_v10  ;;  %364 = vmatprep.mubr.f32.mxu1 %v139_v11  ;;  %v65_v10 = vld [vmem:[#allocation2 + $0x18] sm:$0xff] }
  0x6d   :  { %285 = vmatmul.mubr.f32.gmra.mrb[12].mxu0 %v106_v12  ;;  %365 = vmatmul.mubr.f32.gmra.mrb[12].mxu1 %v138_v13  ;;  %v81_v13 = vld [vmem:[#allocation2 + $0x98] sm:$0xff] }
  0x6e   :  { %289 = vmatprep.mubr.f32.mxu0 %v109_v14  ;;  %369 = vmatprep.mubr.f32.mxu1 %v141_v15 }
  0x71   :  { %290 = vmatmul.mubr.f32.gmra.mrb[14].mxu0 %v108_v16  ;;  %370 = vmatmul.mubr.f32.gmra.mrb[14].mxu1 %v140_v17 }
  0x72   :  { %294 = vmatprep.mubr.f32.mxu0 %v111_v18  ;;  %374 = vmatprep.mubr.f32.mxu1 %v143_v19 }
  0x75   :  { %295 = vmatmul.mubr.f32.gmra.mrb[16].mxu0 %v110_v20  ;;  %375 = vmatmul.mubr.f32.gmra.mrb[16].mxu1 %v142_v21  ;;  %v66_v20 = vld [vmem:[#allocation2 + $0x20] sm:$0xff] }
  0x76   :  { %299 = vmatprep.mubr.f32.mxu0 %v113_v22  ;;  %379 = vmatprep.mubr.f32.mxu1 %v145_v23  ;;  %v82_v23 = vld [vmem:[#allocation2 + $0xa0] sm:$0xff] }
  0x79   :  { %300 = vmatmul.mubr.f32.gmra.mrb[18].mxu0 %v112_v24  ;;  %380 = vmatmul.mubr.f32.gmra.mrb[18].mxu1 %v144_v25 }
  0x7a   :  { %304 = vmatprep.mubr.f32.mxu0 %v115_v26  ;;  %384 = vmatprep.mubr.f32.mxu1 %v147_v27 }
  0x7d   :  { %305 = vmatmul.mubr.f32.gmra.mrb[20].mxu0 %v114_v28  ;;  %385 = vmatmul.mubr.f32.gmra.mrb[20].mxu1 %v146_v29 }
  0x7e   :  { %309 = vmatprep.mubr.f32.mxu0 %v117_v30  ;;  %389 = vmatprep.mubr.f32.mxu1 %v149_v31  ;;  %v67_v30 = vld [vmem:[#allocation2 + $0x28] sm:$0xff] }
  0x81   :  { %310 = vmatmul.mubr.f32.gmra.mrb[22].mxu0 %v116_v32  ;;  %390 = vmatmul.mubr.f32.gmra.mrb[22].mxu1 %v148_v33  ;;  %v83_v33 = vld [vmem:[#allocation2 + $0xa8] sm:$0xff] }
  0x82   :  { %314 = vmatprep.mubr.f32.mxu0 %v119_v34  ;;  %394 = vmatprep.mubr.f32.mxu1 %v151_v35 }
  0x85   :  { %315 = vmatmul.mubr.f32.gmra.mrb[24].mxu0 %v118_v36  ;;  %395 = vmatmul.mubr.f32.gmra.mrb[24].mxu1 %v150_v37 }
  0x86   :  { %319 = vmatprep.mubr.f32.mxu0 %v121_v38  ;;  %399 = vmatprep.mubr.f32.mxu1 %v153_v39 }
  0x89   :  { %320 = vmatmul.mubr.f32.gmra.mrb[26].mxu0 %v120_v40  ;;  %400 = vmatmul.mubr.f32.gmra.mrb[26].mxu1 %v152_v41  ;;  %v68_v40 = vld [vmem:[#allocation2 + $0x30] sm:$0xff] }
  0x8a   :  { %324 = vmatprep.mubr.f32.mxu0 %v123_v42  ;;  %404 = vmatprep.mubr.f32.mxu1 %v155_v43  ;;  %v84_v43 = vld [vmem:[#allocation2 + $0xb0] sm:$0xff] }
  0x8d   :  { %325 = vmatmul.mubr.f32.gmra.mrb[28].mxu0 %v122_v44  ;;  %405 = vmatmul.mubr.f32.gmra.mrb[28].mxu1 %v154_v45 }
  0x8e   :  { %329 = vmatprep.mubr.f32.mxu0 %v125_v46  ;;  %409 = vmatprep.mubr.f32.mxu1 %v157_v47 }
  0x91   :  { %330 = vmatmul.mubr.f32.gmra.mrb[30].mxu0 %v124_v48  ;;  %410 = vmatmul.mubr.f32.gmra.mrb[30].mxu1 %v156_v49 }
 0x128   :  { %v256_v52 = vpop.f32.mrb[0].mxu0  ;;  %v336_v53 = vpop.f32.mrb[0].mxu1 }
 0x129   :  { %v415_v54 = vadd.f32 %v256_v52, %v62_v50  ;;  %v431_v55 = vadd.f32 %v336_v53, %v78_v51  ;;  %v258_v56 = vpop.f32.mrb[1].mxu0  ;;  %v338_v57 = vpop.f32.mrb[1].mxu1  ;;  %v69_v50 = vld [vmem:[#allocation2 + $0x38] sm:$0xff] }
 0x12a   :  { %v85_v53 = vld [vmem:[#allocation2 + $0xb8] sm:$0xff] }
 0x12b   :  { %448 = vst.msk [vmem:[#allocation2] sm:$0xff] %vm29_vm0, %v415_v54  ;;  %464 = vst.msk [vmem:[#allocation2 + $0x80] sm:$0xff] %vm29_vm0, %v431_v55 }
 0x12c   :  { %v261_v60 = vpop.f32.mrb[2].mxu0  ;;  %v341_v61 = vpop.f32.mrb[2].mxu1 }
 0x12d   :  { %v416_v62 = vadd.f32 %v261_v60, %v63_v58  ;;  %v432_v63 = vadd.f32 %v341_v61, %v79_v59  ;;  %v263_v0 = vpop.f32.mrb[3].mxu0  ;;  %v343_v1 = vpop.f32.mrb[3].mxu1  ;;  %v70_v60 = vld [vmem:[#allocation2 + $0x40] sm:$0xff] }
 0x12f   :  { %449 = vst.msk [vmem:[#allocation2 + $0x8] sm:$0xff] %vm29_vm0, %v416_v62  ;;  %465 = vst.msk [vmem:[#allocation2 + $0x88] sm:$0xff] %vm29_vm0, %v432_v63  ;;  %v86_v63 = vld [vmem:[#allocation2 + $0xc0] sm:$0xff] }
 0x130   :  { %v266_v4 = vpop.f32.mrb[4].mxu0  ;;  %v346_v5 = vpop.f32.mrb[4].mxu1 }
 0x131   :  { %v417_v6 = vadd.f32 %v266_v4, %v64_v2  ;;  %v433_v7 = vadd.f32 %v346_v5, %v80_v3  ;;  %v268_v8 = vpop.f32.mrb[5].mxu0  ;;  %v348_v9 = vpop.f32.mrb[5].mxu1 }
 0x132   :  { %v483_v11 = vld [vmem:[#allocation2] sm:$0xff]  ;;  %v87_v9 = vld [vmem:[#allocation2 + $0xc8] sm:$0xff] }
 0x133   :  { %v499_v12 = vld [vmem:[#allocation2 + $0x80] sm:$0xff]  ;;  %515 = vst.msk [vmem:[%s1015_s2] sm:$0xff] %vm29_vm0, %v483_v11  ;;  %450 = vst.msk [vmem:[#allocation2 + $0x10] sm:$0xff] %vm29_vm0, %v417_v6  ;;  %v71_v6 = vld [vmem:[#allocation2 + $0x48] sm:$0xff] }
 0x134   :  { %531 = vst.msk [vmem:[%s1015_s2 + $0x80] sm:$0xff] %vm29_vm0, %v499_v12  ;;  %466 = vst.msk [vmem:[#allocation2 + $0x90] sm:$0xff] %vm29_vm0, %v433_v7  ;;  %v271_v14 = vpop.f32.mrb[6].mxu0  ;;  %v351_v15 = vpop.f32.mrb[6].mxu1 }
 0x135   :  { %v418_v16 = vadd.f32 %v271_v14, %v65_v10  ;;  %v434_v17 = vadd.f32 %v351_v15, %v81_v13  ;;  %v273_v18 = vpop.f32.mrb[7].mxu0  ;;  %v353_v19 = vpop.f32.mrb[7].mxu1 }
 0x136   :  { %v484_v21 = vld [vmem:[#allocation2 + $0x8] sm:$0xff]  ;;  %v88_v19 = vld [vmem:[#allocation2 + $0xd0] sm:$0xff] }
 0x137   :  { %v500_v22 = vld [vmem:[#allocation2 + $0x88] sm:$0xff]  ;;  %516 = vst.msk [vmem:[%s1015_s2 + $0x8] sm:$0xff] %vm29_vm0, %v484_v21  ;;  %451 = vst.msk [vmem:[#allocation2 + $0x18] sm:$0xff] %vm29_vm0, %v418_v16  ;;  %v72_v16 = vld [vmem:[#allocation2 + $0x50] sm:$0xff] }
 0x138   :  { %532 = vst.msk [vmem:[%s1015_s2 + $0x88] sm:$0xff] %vm29_vm0, %v500_v22  ;;  %467 = vst.msk [vmem:[#allocation2 + $0x98] sm:$0xff] %vm29_vm0, %v434_v17  ;;  %v276_v24 = vpop.f32.mrb[8].mxu0  ;;  %v356_v25 = vpop.f32.mrb[8].mxu1 }
 0x139   :  { %v419_v26 = vadd.f32 %v276_v24, %v66_v20  ;;  %v435_v27 = vadd.f32 %v356_v25, %v82_v23  ;;  %v278_v28 = vpop.f32.mrb[9].mxu0  ;;  %v358_v29 = vpop.f32.mrb[9].mxu1 }
 0x13a   :  { %v485_v31 = vld [vmem:[#allocation2 + $0x10] sm:$0xff]  ;;  %v89_v29 = vld [vmem:[#allocation2 + $0xd8] sm:$0xff] }
 0x13b   :  { %v501_v32 = vld [vmem:[#allocation2 + $0x90] sm:$0xff]  ;;  %517 = vst.msk [vmem:[%s1015_s2 + $0x10] sm:$0xff] %vm29_vm0, %v485_v31  ;;  %452 = vst.msk [vmem:[#allocation2 + $0x20] sm:$0xff] %vm29_vm0, %v419_v26  ;;  %v73_v26 = vld [vmem:[#allocation2 + $0x58] sm:$0xff] }
 0x13c   :  { %533 = vst.msk [vmem:[%s1015_s2 + $0x90] sm:$0xff] %vm29_vm0, %v501_v32  ;;  %468 = vst.msk [vmem:[#allocation2 + $0xa0] sm:$0xff] %vm29_vm0, %v435_v27  ;;  %v281_v34 = vpop.f32.mrb[10].mxu0  ;;  %v361_v35 = vpop.f32.mrb[10].mxu1 }
 0x13d   :  { %v420_v36 = vadd.f32 %v281_v34, %v67_v30  ;;  %v436_v37 = vadd.f32 %v361_v35, %v83_v33  ;;  %v283_v38 = vpop.f32.mrb[11].mxu0  ;;  %v363_v39 = vpop.f32.mrb[11].mxu1 }
 0x13e   :  { %v486_v41 = vld [vmem:[#allocation2 + $0x18] sm:$0xff]  ;;  %v90_v39 = vld [vmem:[#allocation2 + $0xe0] sm:$0xff] }
 0x13f   :  { %v502_v42 = vld [vmem:[#allocation2 + $0x98] sm:$0xff]  ;;  %518 = vst.msk [vmem:[%s1015_s2 + $0x18] sm:$0xff] %vm29_vm0, %v486_v41  ;;  %453 = vst.msk [vmem:[#allocation2 + $0x28] sm:$0xff] %vm29_vm0, %v420_v36  ;;  %v74_v36 = vld [vmem:[#allocation2 + $0x60] sm:$0xff] }
 0x140   :  { %534 = vst.msk [vmem:[%s1015_s2 + $0x98] sm:$0xff] %vm29_vm0, %v502_v42  ;;  %469 = vst.msk [vmem:[#allocation2 + $0xa8] sm:$0xff] %vm29_vm0, %v436_v37  ;;  %v286_v44 = vpop.f32.mrb[12].mxu0  ;;  %v366_v45 = vpop.f32.mrb[12].mxu1 }
 0x141   :  { %v421_v46 = vadd.f32 %v286_v44, %v68_v40  ;;  %v437_v47 = vadd.f32 %v366_v45, %v84_v43  ;;  %v288_v48 = vpop.f32.mrb[13].mxu0  ;;  %v368_v49 = vpop.f32.mrb[13].mxu1 }
 0x142   :  { %v487_v51 = vld [vmem:[#allocation2 + $0x20] sm:$0xff]  ;;  %v91_v49 = vld [vmem:[#allocation2 + $0xe8] sm:$0xff] }
 0x143   :  { %v503_v52 = vld [vmem:[#allocation2 + $0xa0] sm:$0xff]  ;;  %519 = vst.msk [vmem:[%s1015_s2 + $0x20] sm:$0xff] %vm29_vm0, %v487_v51  ;;  %454 = vst.msk [vmem:[#allocation2 + $0x30] sm:$0xff] %vm29_vm0, %v421_v46  ;;  %v75_v46 = vld [vmem:[#allocation2 + $0x68] sm:$0xff] }
 0x144   :  { %535 = vst.msk [vmem:[%s1015_s2 + $0xa0] sm:$0xff] %vm29_vm0, %v503_v52  ;;  %470 = vst.msk [vmem:[#allocation2 + $0xb0] sm:$0xff] %vm29_vm0, %v437_v47  ;;  %v291_v54 = vpop.f32.mrb[14].mxu0  ;;  %v371_v55 = vpop.f32.mrb[14].mxu1 }
 0x145   :  { %v422_v56 = vadd.f32 %v291_v54, %v69_v50  ;;  %v438_v57 = vadd.f32 %v371_v55, %v85_v53  ;;  %v293_v58 = vpop.f32.mrb[15].mxu0  ;;  %v373_v59 = vpop.f32.mrb[15].mxu1 }
 0x146   :  { %v488_v61 = vld [vmem:[#allocation2 + $0x28] sm:$0xff]  ;;  %v92_v59 = vld [vmem:[#allocation2 + $0xf0] sm:$0xff] }
 0x147   :  { %v504_v62 = vld [vmem:[#allocation2 + $0xa8] sm:$0xff]  ;;  %520 = vst.msk [vmem:[%s1015_s2 + $0x28] sm:$0xff] %vm29_vm0, %v488_v61  ;;  %455 = vst.msk [vmem:[#allocation2 + $0x38] sm:$0xff] %vm29_vm0, %v422_v56  ;;  %v76_v56 = vld [vmem:[#allocation2 + $0x70] sm:$0xff] }
 0x148   :  { %536 = vst.msk [vmem:[%s1015_s2 + $0xa8] sm:$0xff] %vm29_vm0, %v504_v62  ;;  %471 = vst.msk [vmem:[#allocation2 + $0xb8] sm:$0xff] %vm29_vm0, %v438_v57  ;;  %v296_v0 = vpop.f32.mrb[16].mxu0  ;;  %v376_v1 = vpop.f32.mrb[16].mxu1 }
 0x149   :  { %v423_v2 = vadd.f32 %v296_v0, %v70_v60  ;;  %v439_v3 = vadd.f32 %v376_v1, %v86_v63  ;;  %v298_v4 = vpop.f32.mrb[17].mxu0  ;;  %v378_v5 = vpop.f32.mrb[17].mxu1 }
 0x14a   :  { %v489_v7 = vld [vmem:[#allocation2 + $0x30] sm:$0xff]  ;;  %v93_v5 = vld [vmem:[#allocation2 + $0xf8] sm:$0xff] }
 0x14b   :  { %v505_v8 = vld [vmem:[#allocation2 + $0xb0] sm:$0xff]  ;;  %521 = vst.msk [vmem:[%s1015_s2 + $0x30] sm:$0xff] %vm29_vm0, %v489_v7  ;;  %456 = vst.msk [vmem:[#allocation2 + $0x40] sm:$0xff] %vm29_vm0, %v423_v2  ;;  %v77_v2 = vld [vmem:[#allocation2 + $0x78] sm:$0xff] }
 0x14c   :  { %537 = vst.msk [vmem:[%s1015_s2 + $0xb0] sm:$0xff] %vm29_vm0, %v505_v8  ;;  %472 = vst.msk [vmem:[#allocation2 + $0xc0] sm:$0xff] %vm29_vm0, %v439_v3  ;;  %v301_v10 = vpop.f32.mrb[18].mxu0  ;;  %v381_v11 = vpop.f32.mrb[18].mxu1 }
 0x14d   :  { %v424_v12 = vadd.f32 %v301_v10, %v71_v6  ;;  %v440_v13 = vadd.f32 %v381_v11, %v87_v9  ;;  %v303_v14 = vpop.f32.mrb[19].mxu0  ;;  %v383_v15 = vpop.f32.mrb[19].mxu1 }
 0x14e   :  { %v490_v17 = vld [vmem:[#allocation2 + $0x38] sm:$0xff] }
 0x14f   :  { %v506_v18 = vld [vmem:[#allocation2 + $0xb8] sm:$0xff]  ;;  %522 = vst.msk [vmem:[%s1015_s2 + $0x38] sm:$0xff] %vm29_vm0, %v490_v17  ;;  %457 = vst.msk [vmem:[#allocation2 + $0x48] sm:$0xff] %vm29_vm0, %v424_v12 }
 0x150   :  { %538 = vst.msk [vmem:[%s1015_s2 + $0xb8] sm:$0xff] %vm29_vm0, %v506_v18  ;;  %473 = vst.msk [vmem:[#allocation2 + $0xc8] sm:$0xff] %vm29_vm0, %v440_v13  ;;  %v306_v20 = vpop.f32.mrb[20].mxu0  ;;  %v386_v21 = vpop.f32.mrb[20].mxu1 }
 0x151   :  { %v425_v22 = vadd.f32 %v306_v20, %v72_v16  ;;  %v441_v23 = vadd.f32 %v386_v21, %v88_v19  ;;  %v308_v24 = vpop.f32.mrb[21].mxu0  ;;  %v388_v25 = vpop.f32.mrb[21].mxu1 }
 0x152   :  { %v491_v27 = vld [vmem:[#allocation2 + $0x40] sm:$0xff] }
 0x153   :  { %v507_v28 = vld [vmem:[#allocation2 + $0xc0] sm:$0xff]  ;;  %523 = vst.msk [vmem:[%s1015_s2 + $0x40] sm:$0xff] %vm29_vm0, %v491_v27  ;;  %458 = vst.msk [vmem:[#allocation2 + $0x50] sm:$0xff] %vm29_vm0, %v425_v22 }
 0x154   :  { %539 = vst.msk [vmem:[%s1015_s2 + $0xc0] sm:$0xff] %vm29_vm0, %v507_v28  ;;  %474 = vst.msk [vmem:[#allocation2 + $0xd0] sm:$0xff] %vm29_vm0, %v441_v23  ;;  %v311_v30 = vpop.f32.mrb[22].mxu0  ;;  %v391_v31 = vpop.f32.mrb[22].mxu1 }
 0x155   :  { %v426_v32 = vadd.f32 %v311_v30, %v73_v26  ;;  %v442_v33 = vadd.f32 %v391_v31, %v89_v29  ;;  %v313_v34 = vpop.f32.mrb[23].mxu0  ;;  %v393_v35 = vpop.f32.mrb[23].mxu1 }
 0x156   :  { %v492_v37 = vld [vmem:[#allocation2 + $0x48] sm:$0xff] }
 0x157   :  { %v508_v38 = vld [vmem:[#allocation2 + $0xc8] sm:$0xff]  ;;  %524 = vst.msk [vmem:[%s1015_s2 + $0x48] sm:$0xff] %vm29_vm0, %v492_v37  ;;  %459 = vst.msk [vmem:[#allocation2 + $0x58] sm:$0xff] %vm29_vm0, %v426_v32 }
 0x158   :  { %540 = vst.msk [vmem:[%s1015_s2 + $0xc8] sm:$0xff] %vm29_vm0, %v508_v38  ;;  %475 = vst.msk [vmem:[#allocation2 + $0xd8] sm:$0xff] %vm29_vm0, %v442_v33  ;;  %v316_v40 = vpop.f32.mrb[24].mxu0  ;;  %v396_v41 = vpop.f32.mrb[24].mxu1 }
 0x159   :  { %v427_v42 = vadd.f32 %v316_v40, %v74_v36  ;;  %v443_v43 = vadd.f32 %v396_v41, %v90_v39  ;;  %v318_v44 = vpop.f32.mrb[25].mxu0  ;;  %v398_v45 = vpop.f32.mrb[25].mxu1 }
 0x15a   :  { %v493_v47 = vld [vmem:[#allocation2 + $0x50] sm:$0xff] }
 0x15b   :  { %v509_v48 = vld [vmem:[#allocation2 + $0xd0] sm:$0xff]  ;;  %525 = vst.msk [vmem:[%s1015_s2 + $0x50] sm:$0xff] %vm29_vm0, %v493_v47  ;;  %460 = vst.msk [vmem:[#allocation2 + $0x60] sm:$0xff] %vm29_vm0, %v427_v42 }
 0x15c   :  { %541 = vst.msk [vmem:[%s1015_s2 + $0xd0] sm:$0xff] %vm29_vm0, %v509_v48  ;;  %476 = vst.msk [vmem:[#allocation2 + $0xe0] sm:$0xff] %vm29_vm0, %v443_v43  ;;  %v321_v50 = vpop.f32.mrb[26].mxu0  ;;  %v401_v51 = vpop.f32.mrb[26].mxu1 }
 0x15d   :  { %v428_v52 = vadd.f32 %v321_v50, %v75_v46  ;;  %v444_v53 = vadd.f32 %v401_v51, %v91_v49  ;;  %v323_v54 = vpop.f32.mrb[27].mxu0  ;;  %v403_v55 = vpop.f32.mrb[27].mxu1 }
 0x15e   :  { %v494_v57 = vld [vmem:[#allocation2 + $0x58] sm:$0xff] }
 0x15f   :  { %v510_v58 = vld [vmem:[#allocation2 + $0xd8] sm:$0xff]  ;;  %526 = vst.msk [vmem:[%s1015_s2 + $0x58] sm:$0xff] %vm29_vm0, %v494_v57  ;;  %461 = vst.msk [vmem:[#allocation2 + $0x68] sm:$0xff] %vm29_vm0, %v428_v52 }
 0x160   :  { %542 = vst.msk [vmem:[%s1015_s2 + $0xd8] sm:$0xff] %vm29_vm0, %v510_v58  ;;  %477 = vst.msk [vmem:[#allocation2 + $0xe8] sm:$0xff] %vm29_vm0, %v444_v53  ;;  %v326_v60 = vpop.f32.mrb[28].mxu0  ;;  %v406_v61 = vpop.f32.mrb[28].mxu1 }
 0x161   :  { %v429_v62 = vadd.f32 %v326_v60, %v76_v56  ;;  %v445_v63 = vadd.f32 %v406_v61, %v92_v59  ;;  %v328_v0 = vpop.f32.mrb[29].mxu0  ;;  %v408_v1 = vpop.f32.mrb[29].mxu1 }
 0x162   :  { %v495_v3 = vld [vmem:[#allocation2 + $0x60] sm:$0xff] }
 0x163   :  { %v511_v4 = vld [vmem:[#allocation2 + $0xe0] sm:$0xff]  ;;  %527 = vst.msk [vmem:[%s1015_s2 + $0x60] sm:$0xff] %vm29_vm0, %v495_v3  ;;  %462 = vst.msk [vmem:[#allocation2 + $0x70] sm:$0xff] %vm29_vm0, %v429_v62 }
 0x164   :  { %543 = vst.msk [vmem:[%s1015_s2 + $0xe0] sm:$0xff] %vm29_vm0, %v511_v4  ;;  %478 = vst.msk [vmem:[#allocation2 + $0xf0] sm:$0xff] %vm29_vm0, %v445_v63  ;;  %v331_v6 = vpop.f32.mrb[30].mxu0  ;;  %v411_v7 = vpop.f32.mrb[30].mxu1 }
 0x165   :  { %v430_v8 = vadd.f32 %v331_v6, %v77_v2  ;;  %v446_v9 = vadd.f32 %v411_v7, %v93_v5  ;;  %v333_v10 = vpop.f32.mrb[31].mxu0  ;;  %v413_v11 = vpop.f32.mrb[31].mxu1 }
 0x166   :  { %v496_v12 = vld [vmem:[#allocation2 + $0x68] sm:$0xff] }
 0x167   :  { %v512_v13 = vld [vmem:[#allocation2 + $0xe8] sm:$0xff]  ;;  %528 = vst.msk [vmem:[%s1015_s2 + $0x68] sm:$0xff] %vm29_vm0, %v496_v12  ;;  %463 = vst.msk [vmem:[#allocation2 + $0x78] sm:$0xff] %vm29_vm0, %v430_v8 }
 0x168   :  { %544 = vst.msk [vmem:[%s1015_s2 + $0xe8] sm:$0xff] %vm29_vm0, %v512_v13  ;;  %479 = vst.msk [vmem:[#allocation2 + $0xf8] sm:$0xff] %vm29_vm0, %v446_v9 }
 0x16a   :  { %v497_v14 = vld [vmem:[#allocation2 + $0x70] sm:$0xff] }
 0x16b   :  { %v513_v15 = vld [vmem:[#allocation2 + $0xf0] sm:$0xff]  ;;  %529 = vst.msk [vmem:[%s1015_s2 + $0x70] sm:$0xff] %vm29_vm0, %v497_v14 }
 0x16c   :  { %545 = vst.msk [vmem:[%s1015_s2 + $0xf0] sm:$0xff] %vm29_vm0, %v513_v15 }
 0x16e   :  { %v498_v16 = vld [vmem:[#allocation2 + $0x78] sm:$0xff] }
 0x16f   :  { %v514_v17 = vld [vmem:[#allocation2 + $0xf8] sm:$0xff]  ;;  %530 = vst.msk [vmem:[%s1015_s2 + $0x78] sm:$0xff] %vm29_vm0, %v498_v16 }
 0x170   :  { %546 = vst.msk [vmem:[%s1015_s2 + $0xf8] sm:$0xff] %vm29_vm0, %v514_v17 }
 0x171   :  { %551 = vsyncpa [#allocation4], 1 }

</bundles_post_ra>
